<compile_context>
chip_gen: v5e
topology: v5e:2x2
jax: 0.10.0
libtpu: 0.0.40
codegen_flags: <defaults>
</compile_context>

<pallas_src>
import jax
import jax.numpy as jnp
from jax.experimental import pallas as pl
from jax.experimental.pallas import tpu as pltpu

# Packed-parameter layout (row-major, weights stored [in, out]):
#   w1: [8,6] -> offsets  0..47
#   b1: [6]   -> offsets 48..53
#   w2: [6,4] -> offsets 54..77
#   b2: [4]   -> offsets 78..81
#   w3: [4,1] -> offsets 82..85
#   b3: [1]   -> offset  86
W1_OFF, B1_OFF = 0, 48
W2_OFF, B2_OFF = 54, 78
W3_OFF, B3_OFF = 82, 86
N_PARAMS = 87


def mlp_kernel(params_ref, xt_ref, o_ref):
    # params_ref: [87] f32 in SMEM (scalar reads)
    # xt_ref:     [8, tile_B] f32 in VMEM (features in sublanes, batch in lanes)
    # o_ref:      [1, tile_B] f32 in VMEM (lane-dense output)
    tile_b = xt_ref.shape[1]

    def layer(h_rows, in_dim, out_dim, w_off, b_off):
        # h_rows: python list of in_dim arrays, each [1, tile_B]
        out_rows = []
        for j in range(out_dim):
            acc = jnp.full((1, tile_b), params_ref[b_off + j], dtype=jnp.float32)
            for k in range(in_dim):
                acc = acc + params_ref[w_off + k * out_dim + j] * h_rows[k]
            out_rows.append(jax.nn.sigmoid(acc))
        return out_rows

    # 8 feature rows of the input tile, each a [1, tile_B] lane-dense vector.
    x_rows = [xt_ref[k:k + 1, :] for k in range(8)]

    h1 = layer(x_rows, 8, 6, W1_OFF, B1_OFF)
    h2 = layer(h1, 6, 4, W2_OFF, B2_OFF)
    h3 = layer(h2, 4, 1, W3_OFF, B3_OFF)

    o_ref[...] = h3[0].astype(o_ref.dtype)


def mlp_forward(x, params, *, tile_b=32768):
    """x: [B, 8] float32 (PyTorch layout). Returns [B, 1] float32."""
    B = x.shape[0]
    lane = 128
    # Tile width must be a multiple of 128 lanes; don't tile wider than needed.
    tile_b = max(lane, (tile_b // lane) * lane)
    b_min = ((B + lane - 1) // lane) * lane          # padded batch, 128-aligned
    tb = min(tile_b, b_min)
    Bp = ((B + tb - 1) // tb) * tb
    grid = (Bp // tb,)

    # Wrapper-side re-layout: features into sublanes, batch into lanes (+ pad).
    xt = jnp.zeros((8, Bp), jnp.float32).at[:, :B].set(x.astype(jnp.float32).T)

    out = pl.pallas_call(
        mlp_kernel,
        out_shape=jax.ShapeDtypeStruct((1, Bp), jnp.float32),
        grid=grid,
        in_specs=[
            # Single packed weight/bias blob, resident in SMEM (scalar reads).
            pl.BlockSpec(memory_space=pltpu.MemorySpace.SMEM),
            # Streaming batch tiles of x, lane-major, auto double-buffered.
            pl.BlockSpec((8, tb), lambda i: (0, i)),
        ],
        out_specs=pl.BlockSpec((1, tb), lambda i: (0, i)),
        compiler_params=pltpu.CompilerParams(
            dimension_semantics=("parallel",)),
    )(params, xt)

    # Back to the PyTorch output layout [B, 1].
    return out[:, :B].T


def init_params(key):
    # Deterministic init matching PyTorch nn.Linear shapes:
    # linear1: (6,8), linear2: (4,6), linear3: (1,4). Stored transposed [in, out]
    # so the forward computes x @ W + b.
    ks = jax.random.split(key, 6)

    def linear(kw, kb, fan_in, fan_out):
        bound = 1.0 / jnp.sqrt(fan_in)
        w = jax.random.uniform(kw, (fan_in, fan_out), jnp.float32, -bound, bound)
        b = jax.random.uniform(kb, (1, fan_out), jnp.float32, -bound, bound)
        return w, b

    w1, b1 = linear(ks[0], ks[1], 8, 6)
    w2, b2 = linear(ks[2], ks[3], 6, 4)
    w3, b3 = linear(ks[4], ks[5], 4, 1)
    return w1, b1, w2, b2, w3, b3


def pack_params(w1, b1, w2, b2, w3, b3):
    return jnp.concatenate([
        w1.reshape(-1), b1.reshape(-1),
        w2.reshape(-1), b2.reshape(-1),
        w3.reshape(-1), b3.reshape(-1),
    ]).astype(jnp.float32)


def reference_forward(x, w1, b1, w2, b2, w3, b3):
    h = jax.nn.sigmoid(x @ w1 + b1)
    h = jax.nn.sigmoid(h @ w2 + b2)
    return jax.nn.sigmoid(h @ w3 + b3)


if __name__ == "__main__":
    key = jax.random.PRNGKey(0)
    kx, kp = jax.random.split(key)
    B = 16
    x = jax.random.normal(kx, (B, 8), jnp.float32)
    w1, b1, w2, b2, w3, b3 = init_params(kp)
    params = pack_params(w1, b1, w2, b2, w3, b3)
    assert params.shape == (N_PARAMS,)

    out = mlp_forward(x, params)
    out = jax.block_until_ready(out)

    ref = reference_forward(x, w1, b1, w2, b2, w3, b3)
    assert out.shape == (B, 1)
    assert jnp.allclose(out, ref, atol=1e-5, rtol=1e-5)
    print("KERNEL_OK")
</pallas_src>

<mosaic_0001>
module attributes {stable_mosaic.version = 11 : i64} {
  func.func @mlp_kernel(%arg0: i32, %arg1: memref<87xf32, #tpu.memory_space<smem>>, %arg2: memref<8x128xf32, #tpu.memory_space<vmem>>, %arg3: memref<1x128xf32, #tpu.memory_space<vmem>>) attributes {dimension_semantics = [#tpu.dimension_semantics<parallel>], iteration_bounds = array<i64: 1>, scalar_prefetch = 0 : i64, scratch_operands = 0 : i64, tpu.core_type = #tpu.core_type<tc>, window_params = [{transform_indices = @transform_0, window_bounds = array<i64: 87>}, {transform_indices = @transform_1, window_bounds = array<i64: 8, 128>}, {transform_indices = @transform_2, window_bounds = array<i64: 1, 128>}]} {
    %c0 = arith.constant 0 : index
    %c0_0 = arith.constant 0 : index
    %0 = vector.load %arg2[%c0, %c0_0] : memref<8x128xf32, #tpu.memory_space<vmem>>, vector<1x128xf32>
    %c1 = arith.constant 1 : index
    %c0_1 = arith.constant 0 : index
    %1 = vector.load %arg2[%c1, %c0_1] : memref<8x128xf32, #tpu.memory_space<vmem>>, vector<1x128xf32>
    %c2 = arith.constant 2 : index
    %c0_2 = arith.constant 0 : index
    %2 = vector.load %arg2[%c2, %c0_2] : memref<8x128xf32, #tpu.memory_space<vmem>>, vector<1x128xf32>
    %c3 = arith.constant 3 : index
    %c0_3 = arith.constant 0 : index
    %3 = vector.load %arg2[%c3, %c0_3] : memref<8x128xf32, #tpu.memory_space<vmem>>, vector<1x128xf32>
    %c4 = arith.constant 4 : index
    %c0_4 = arith.constant 0 : index
    %4 = vector.load %arg2[%c4, %c0_4] : memref<8x128xf32, #tpu.memory_space<vmem>>, vector<1x128xf32>
    %c5 = arith.constant 5 : index
    %c0_5 = arith.constant 0 : index
    %5 = vector.load %arg2[%c5, %c0_5] : memref<8x128xf32, #tpu.memory_space<vmem>>, vector<1x128xf32>
    %c6 = arith.constant 6 : index
    %c0_6 = arith.constant 0 : index
    %6 = vector.load %arg2[%c6, %c0_6] : memref<8x128xf32, #tpu.memory_space<vmem>>, vector<1x128xf32>
    %c7 = arith.constant 7 : index
    %c0_7 = arith.constant 0 : index
    %7 = vector.load %arg2[%c7, %c0_7] : memref<8x128xf32, #tpu.memory_space<vmem>>, vector<1x128xf32>
    %c48 = arith.constant 48 : index
    %8 = memref.load %arg1[%c48] : memref<87xf32, #tpu.memory_space<smem>>
    %9 = vector.broadcast %8 : f32 to vector<1x128xf32>
    %c0_8 = arith.constant 0 : index
    %10 = memref.load %arg1[%c0_8] : memref<87xf32, #tpu.memory_space<smem>>
    %11 = vector.broadcast %10 : f32 to vector<1x128xf32>
    %12 = arith.mulf %11, %0 : vector<1x128xf32>
    %13 = arith.addf %9, %12 : vector<1x128xf32>
    %c6_9 = arith.constant 6 : index
    %14 = memref.load %arg1[%c6_9] : memref<87xf32, #tpu.memory_space<smem>>
    %15 = vector.broadcast %14 : f32 to vector<1x128xf32>
    %16 = arith.mulf %15, %1 : vector<1x128xf32>
    %17 = arith.addf %13, %16 : vector<1x128xf32>
    %c12 = arith.constant 12 : index
    %18 = memref.load %arg1[%c12] : memref<87xf32, #tpu.memory_space<smem>>
    %19 = vector.broadcast %18 : f32 to vector<1x128xf32>
    %20 = arith.mulf %19, %2 : vector<1x128xf32>
    %21 = arith.addf %17, %20 : vector<1x128xf32>
    %c18 = arith.constant 18 : index
    %22 = memref.load %arg1[%c18] : memref<87xf32, #tpu.memory_space<smem>>
    %23 = vector.broadcast %22 : f32 to vector<1x128xf32>
    %24 = arith.mulf %23, %3 : vector<1x128xf32>
    %25 = arith.addf %21, %24 : vector<1x128xf32>
    %c24 = arith.constant 24 : index
    %26 = memref.load %arg1[%c24] : memref<87xf32, #tpu.memory_space<smem>>
    %27 = vector.broadcast %26 : f32 to vector<1x128xf32>
    %28 = arith.mulf %27, %4 : vector<1x128xf32>
    %29 = arith.addf %25, %28 : vector<1x128xf32>
    %c30 = arith.constant 30 : index
    %30 = memref.load %arg1[%c30] : memref<87xf32, #tpu.memory_space<smem>>
    %31 = vector.broadcast %30 : f32 to vector<1x128xf32>
    %32 = arith.mulf %31, %5 : vector<1x128xf32>
    %33 = arith.addf %29, %32 : vector<1x128xf32>
    %c36 = arith.constant 36 : index
    %34 = memref.load %arg1[%c36] : memref<87xf32, #tpu.memory_space<smem>>
    %35 = vector.broadcast %34 : f32 to vector<1x128xf32>
    %36 = arith.mulf %35, %6 : vector<1x128xf32>
    %37 = arith.addf %33, %36 : vector<1x128xf32>
    %c42 = arith.constant 42 : index
    %38 = memref.load %arg1[%c42] : memref<87xf32, #tpu.memory_space<smem>>
    %39 = vector.broadcast %38 : f32 to vector<1x128xf32>
    %40 = arith.mulf %39, %7 : vector<1x128xf32>
    %41 = arith.addf %37, %40 : vector<1x128xf32>
    %42 = arith.negf %41 : vector<1x128xf32>
    %43 = math.exp %42 : vector<1x128xf32>
    %cst = arith.constant 1.000000e+00 : f32
    %44 = vector.broadcast %cst : f32 to vector<1x128xf32>
    %45 = arith.addf %44, %43 : vector<1x128xf32>
    %46 = arith.divf %44, %45 : vector<1x128xf32>
    %c49 = arith.constant 49 : index
    %47 = memref.load %arg1[%c49] : memref<87xf32, #tpu.memory_space<smem>>
    %48 = vector.broadcast %47 : f32 to vector<1x128xf32>
    %c1_10 = arith.constant 1 : index
    %49 = memref.load %arg1[%c1_10] : memref<87xf32, #tpu.memory_space<smem>>
    %50 = vector.broadcast %49 : f32 to vector<1x128xf32>
    %51 = arith.mulf %50, %0 : vector<1x128xf32>
    %52 = arith.addf %48, %51 : vector<1x128xf32>
    %c7_11 = arith.constant 7 : index
    %53 = memref.load %arg1[%c7_11] : memref<87xf32, #tpu.memory_space<smem>>
    %54 = vector.broadcast %53 : f32 to vector<1x128xf32>
    %55 = arith.mulf %54, %1 : vector<1x128xf32>
    %56 = arith.addf %52, %55 : vector<1x128xf32>
    %c13 = arith.constant 13 : index
    %57 = memref.load %arg1[%c13] : memref<87xf32, #tpu.memory_space<smem>>
    %58 = vector.broadcast %57 : f32 to vector<1x128xf32>
    %59 = arith.mulf %58, %2 : vector<1x128xf32>
    %60 = arith.addf %56, %59 : vector<1x128xf32>
    %c19 = arith.constant 19 : index
    %61 = memref.load %arg1[%c19] : memref<87xf32, #tpu.memory_space<smem>>
    %62 = vector.broadcast %61 : f32 to vector<1x128xf32>
    %63 = arith.mulf %62, %3 : vector<1x128xf32>
    %64 = arith.addf %60, %63 : vector<1x128xf32>
    %c25 = arith.constant 25 : index
    %65 = memref.load %arg1[%c25] : memref<87xf32, #tpu.memory_space<smem>>
    %66 = vector.broadcast %65 : f32 to vector<1x128xf32>
    %67 = arith.mulf %66, %4 : vector<1x128xf32>
    %68 = arith.addf %64, %67 : vector<1x128xf32>
    %c31 = arith.constant 31 : index
    %69 = memref.load %arg1[%c31] : memref<87xf32, #tpu.memory_space<smem>>
    %70 = vector.broadcast %69 : f32 to vector<1x128xf32>
    %71 = arith.mulf %70, %5 : vector<1x128xf32>
    %72 = arith.addf %68, %71 : vector<1x128xf32>
    %c37 = arith.constant 37 : index
    %73 = memref.load %arg1[%c37] : memref<87xf32, #tpu.memory_space<smem>>
    %74 = vector.broadcast %73 : f32 to vector<1x128xf32>
    %75 = arith.mulf %74, %6 : vector<1x128xf32>
    %76 = arith.addf %72, %75 : vector<1x128xf32>
    %c43 = arith.constant 43 : index
    %77 = memref.load %arg1[%c43] : memref<87xf32, #tpu.memory_space<smem>>
    %78 = vector.broadcast %77 : f32 to vector<1x128xf32>
    %79 = arith.mulf %78, %7 : vector<1x128xf32>
    %80 = arith.addf %76, %79 : vector<1x128xf32>
    %81 = arith.negf %80 : vector<1x128xf32>
    %82 = math.exp %81 : vector<1x128xf32>
    %cst_12 = arith.constant 1.000000e+00 : f32
    %83 = vector.broadcast %cst_12 : f32 to vector<1x128xf32>
    %84 = arith.addf %83, %82 : vector<1x128xf32>
    %85 = arith.divf %83, %84 : vector<1x128xf32>
    %c50 = arith.constant 50 : index
    %86 = memref.load %arg1[%c50] : memref<87xf32, #tpu.memory_space<smem>>
    %87 = vector.broadcast %86 : f32 to vector<1x128xf32>
    %c2_13 = arith.constant 2 : index
    %88 = memref.load %arg1[%c2_13] : memref<87xf32, #tpu.memory_space<smem>>
    %89 = vector.broadcast %88 : f32 to vector<1x128xf32>
    %90 = arith.mulf %89, %0 : vector<1x128xf32>
    %91 = arith.addf %87, %90 : vector<1x128xf32>
    %c8 = arith.constant 8 : index
    %92 = memref.load %arg1[%c8] : memref<87xf32, #tpu.memory_space<smem>>
    %93 = vector.broadcast %92 : f32 to vector<1x128xf32>
    %94 = arith.mulf %93, %1 : vector<1x128xf32>
    %95 = arith.addf %91, %94 : vector<1x128xf32>
    %c14 = arith.constant 14 : index
    %96 = memref.load %arg1[%c14] : memref<87xf32, #tpu.memory_space<smem>>
    %97 = vector.broadcast %96 : f32 to vector<1x128xf32>
    %98 = arith.mulf %97, %2 : vector<1x128xf32>
    %99 = arith.addf %95, %98 : vector<1x128xf32>
    %c20 = arith.constant 20 : index
    %100 = memref.load %arg1[%c20] : memref<87xf32, #tpu.memory_space<smem>>
    %101 = vector.broadcast %100 : f32 to vector<1x128xf32>
    %102 = arith.mulf %101, %3 : vector<1x128xf32>
    %103 = arith.addf %99, %102 : vector<1x128xf32>
    %c26 = arith.constant 26 : index
    %104 = memref.load %arg1[%c26] : memref<87xf32, #tpu.memory_space<smem>>
    %105 = vector.broadcast %104 : f32 to vector<1x128xf32>
    %106 = arith.mulf %105, %4 : vector<1x128xf32>
    %107 = arith.addf %103, %106 : vector<1x128xf32>
    %c32 = arith.constant 32 : index
    %108 = memref.load %arg1[%c32] : memref<87xf32, #tpu.memory_space<smem>>
    %109 = vector.broadcast %108 : f32 to vector<1x128xf32>
    %110 = arith.mulf %109, %5 : vector<1x128xf32>
    %111 = arith.addf %107, %110 : vector<1x128xf32>
    %c38 = arith.constant 38 : index
    %112 = memref.load %arg1[%c38] : memref<87xf32, #tpu.memory_space<smem>>
    %113 = vector.broadcast %112 : f32 to vector<1x128xf32>
    %114 = arith.mulf %113, %6 : vector<1x128xf32>
    %115 = arith.addf %111, %114 : vector<1x128xf32>
    %c44 = arith.constant 44 : index
    %116 = memref.load %arg1[%c44] : memref<87xf32, #tpu.memory_space<smem>>
    %117 = vector.broadcast %116 : f32 to vector<1x128xf32>
    %118 = arith.mulf %117, %7 : vector<1x128xf32>
    %119 = arith.addf %115, %118 : vector<1x128xf32>
    %120 = arith.negf %119 : vector<1x128xf32>
    %121 = math.exp %120 : vector<1x128xf32>
    %cst_14 = arith.constant 1.000000e+00 : f32
    %122 = vector.broadcast %cst_14 : f32 to vector<1x128xf32>
    %123 = arith.addf %122, %121 : vector<1x128xf32>
    %124 = arith.divf %122, %123 : vector<1x128xf32>
    %c51 = arith.constant 51 : index
    %125 = memref.load %arg1[%c51] : memref<87xf32, #tpu.memory_space<smem>>
    %126 = vector.broadcast %125 : f32 to vector<1x128xf32>
    %c3_15 = arith.constant 3 : index
    %127 = memref.load %arg1[%c3_15] : memref<87xf32, #tpu.memory_space<smem>>
    %128 = vector.broadcast %127 : f32 to vector<1x128xf32>
    %129 = arith.mulf %128, %0 : vector<1x128xf32>
    %130 = arith.addf %126, %129 : vector<1x128xf32>
    %c9 = arith.constant 9 : index
    %131 = memref.load %arg1[%c9] : memref<87xf32, #tpu.memory_space<smem>>
    %132 = vector.broadcast %131 : f32 to vector<1x128xf32>
    %133 = arith.mulf %132, %1 : vector<1x128xf32>
    %134 = arith.addf %130, %133 : vector<1x128xf32>
    %c15 = arith.constant 15 : index
    %135 = memref.load %arg1[%c15] : memref<87xf32, #tpu.memory_space<smem>>
    %136 = vector.broadcast %135 : f32 to vector<1x128xf32>
    %137 = arith.mulf %136, %2 : vector<1x128xf32>
    %138 = arith.addf %134, %137 : vector<1x128xf32>
    %c21 = arith.constant 21 : index
    %139 = memref.load %arg1[%c21] : memref<87xf32, #tpu.memory_space<smem>>
    %140 = vector.broadcast %139 : f32 to vector<1x128xf32>
    %141 = arith.mulf %140, %3 : vector<1x128xf32>
    %142 = arith.addf %138, %141 : vector<1x128xf32>
    %c27 = arith.constant 27 : index
    %143 = memref.load %arg1[%c27] : memref<87xf32, #tpu.memory_space<smem>>
    %144 = vector.broadcast %143 : f32 to vector<1x128xf32>
    %145 = arith.mulf %144, %4 : vector<1x128xf32>
    %146 = arith.addf %142, %145 : vector<1x128xf32>
    %c33 = arith.constant 33 : index
    %147 = memref.load %arg1[%c33] : memref<87xf32, #tpu.memory_space<smem>>
    %148 = vector.broadcast %147 : f32 to vector<1x128xf32>
    %149 = arith.mulf %148, %5 : vector<1x128xf32>
    %150 = arith.addf %146, %149 : vector<1x128xf32>
    %c39 = arith.constant 39 : index
    %151 = memref.load %arg1[%c39] : memref<87xf32, #tpu.memory_space<smem>>
    %152 = vector.broadcast %151 : f32 to vector<1x128xf32>
    %153 = arith.mulf %152, %6 : vector<1x128xf32>
    %154 = arith.addf %150, %153 : vector<1x128xf32>
    %c45 = arith.constant 45 : index
    %155 = memref.load %arg1[%c45] : memref<87xf32, #tpu.memory_space<smem>>
    %156 = vector.broadcast %155 : f32 to vector<1x128xf32>
    %157 = arith.mulf %156, %7 : vector<1x128xf32>
    %158 = arith.addf %154, %157 : vector<1x128xf32>
    %159 = arith.negf %158 : vector<1x128xf32>
    %160 = math.exp %159 : vector<1x128xf32>
    %cst_16 = arith.constant 1.000000e+00 : f32
    %161 = vector.broadcast %cst_16 : f32 to vector<1x128xf32>
    %162 = arith.addf %161, %160 : vector<1x128xf32>
    %163 = arith.divf %161, %162 : vector<1x128xf32>
    %c52 = arith.constant 52 : index
    %164 = memref.load %arg1[%c52] : memref<87xf32, #tpu.memory_space<smem>>
    %165 = vector.broadcast %164 : f32 to vector<1x128xf32>
    %c4_17 = arith.constant 4 : index
    %166 = memref.load %arg1[%c4_17] : memref<87xf32, #tpu.memory_space<smem>>
    %167 = vector.broadcast %166 : f32 to vector<1x128xf32>
    %168 = arith.mulf %167, %0 : vector<1x128xf32>
    %169 = arith.addf %165, %168 : vector<1x128xf32>
    %c10 = arith.constant 10 : index
    %170 = memref.load %arg1[%c10] : memref<87xf32, #tpu.memory_space<smem>>
    %171 = vector.broadcast %170 : f32 to vector<1x128xf32>
    %172 = arith.mulf %171, %1 : vector<1x128xf32>
    %173 = arith.addf %169, %172 : vector<1x128xf32>
    %c16 = arith.constant 16 : index
    %174 = memref.load %arg1[%c16] : memref<87xf32, #tpu.memory_space<smem>>
    %175 = vector.broadcast %174 : f32 to vector<1x128xf32>
    %176 = arith.mulf %175, %2 : vector<1x128xf32>
    %177 = arith.addf %173, %176 : vector<1x128xf32>
    %c22 = arith.constant 22 : index
    %178 = memref.load %arg1[%c22] : memref<87xf32, #tpu.memory_space<smem>>
    %179 = vector.broadcast %178 : f32 to vector<1x128xf32>
    %180 = arith.mulf %179, %3 : vector<1x128xf32>
    %181 = arith.addf %177, %180 : vector<1x128xf32>
    %c28 = arith.constant 28 : index
    %182 = memref.load %arg1[%c28] : memref<87xf32, #tpu.memory_space<smem>>
    %183 = vector.broadcast %182 : f32 to vector<1x128xf32>
    %184 = arith.mulf %183, %4 : vector<1x128xf32>
    %185 = arith.addf %181, %184 : vector<1x128xf32>
    %c34 = arith.constant 34 : index
    %186 = memref.load %arg1[%c34] : memref<87xf32, #tpu.memory_space<smem>>
    %187 = vector.broadcast %186 : f32 to vector<1x128xf32>
    %188 = arith.mulf %187, %5 : vector<1x128xf32>
    %189 = arith.addf %185, %188 : vector<1x128xf32>
    %c40 = arith.constant 40 : index
    %190 = memref.load %arg1[%c40] : memref<87xf32, #tpu.memory_space<smem>>
    %191 = vector.broadcast %190 : f32 to vector<1x128xf32>
    %192 = arith.mulf %191, %6 : vector<1x128xf32>
    %193 = arith.addf %189, %192 : vector<1x128xf32>
    %c46 = arith.constant 46 : index
    %194 = memref.load %arg1[%c46] : memref<87xf32, #tpu.memory_space<smem>>
    %195 = vector.broadcast %194 : f32 to vector<1x128xf32>
    %196 = arith.mulf %195, %7 : vector<1x128xf32>
    %197 = arith.addf %193, %196 : vector<1x128xf32>
    %198 = arith.negf %197 : vector<1x128xf32>
    %199 = math.exp %198 : vector<1x128xf32>
    %cst_18 = arith.constant 1.000000e+00 : f32
    %200 = vector.broadcast %cst_18 : f32 to vector<1x128xf32>
    %201 = arith.addf %200, %199 : vector<1x128xf32>
    %202 = arith.divf %200, %201 : vector<1x128xf32>
    %c53 = arith.constant 53 : index
    %203 = memref.load %arg1[%c53] : memref<87xf32, #tpu.memory_space<smem>>
    %204 = vector.broadcast %203 : f32 to vector<1x128xf32>
    %c5_19 = arith.constant 5 : index
    %205 = memref.load %arg1[%c5_19] : memref<87xf32, #tpu.memory_space<smem>>
    %206 = vector.broadcast %205 : f32 to vector<1x128xf32>
    %207 = arith.mulf %206, %0 : vector<1x128xf32>
    %208 = arith.addf %204, %207 : vector<1x128xf32>
    %c11 = arith.constant 11 : index
    %209 = memref.load %arg1[%c11] : memref<87xf32, #tpu.memory_space<smem>>
    %210 = vector.broadcast %209 : f32 to vector<1x128xf32>
    %211 = arith.mulf %210, %1 : vector<1x128xf32>
    %212 = arith.addf %208, %211 : vector<1x128xf32>
    %c17 = arith.constant 17 : index
    %213 = memref.load %arg1[%c17] : memref<87xf32, #tpu.memory_space<smem>>
    %214 = vector.broadcast %213 : f32 to vector<1x128xf32>
    %215 = arith.mulf %214, %2 : vector<1x128xf32>
    %216 = arith.addf %212, %215 : vector<1x128xf32>
    %c23 = arith.constant 23 : index
    %217 = memref.load %arg1[%c23] : memref<87xf32, #tpu.memory_space<smem>>
    %218 = vector.broadcast %217 : f32 to vector<1x128xf32>
    %219 = arith.mulf %218, %3 : vector<1x128xf32>
    %220 = arith.addf %216, %219 : vector<1x128xf32>
    %c29 = arith.constant 29 : index
    %221 = memref.load %arg1[%c29] : memref<87xf32, #tpu.memory_space<smem>>
    %222 = vector.broadcast %221 : f32 to vector<1x128xf32>
    %223 = arith.mulf %222, %4 : vector<1x128xf32>
    %224 = arith.addf %220, %223 : vector<1x128xf32>
    %c35 = arith.constant 35 : index
    %225 = memref.load %arg1[%c35] : memref<87xf32, #tpu.memory_space<smem>>
    %226 = vector.broadcast %225 : f32 to vector<1x128xf32>
    %227 = arith.mulf %226, %5 : vector<1x128xf32>
    %228 = arith.addf %224, %227 : vector<1x128xf32>
    %c41 = arith.constant 41 : index
    %229 = memref.load %arg1[%c41] : memref<87xf32, #tpu.memory_space<smem>>
    %230 = vector.broadcast %229 : f32 to vector<1x128xf32>
    %231 = arith.mulf %230, %6 : vector<1x128xf32>
    %232 = arith.addf %228, %231 : vector<1x128xf32>
    %c47 = arith.constant 47 : index
    %233 = memref.load %arg1[%c47] : memref<87xf32, #tpu.memory_space<smem>>
    %234 = vector.broadcast %233 : f32 to vector<1x128xf32>
    %235 = arith.mulf %234, %7 : vector<1x128xf32>
    %236 = arith.addf %232, %235 : vector<1x128xf32>
    %237 = arith.negf %236 : vector<1x128xf32>
    %238 = math.exp %237 : vector<1x128xf32>
    %cst_20 = arith.constant 1.000000e+00 : f32
    %239 = vector.broadcast %cst_20 : f32 to vector<1x128xf32>
    %240 = arith.addf %239, %238 : vector<1x128xf32>
    %241 = arith.divf %239, %240 : vector<1x128xf32>
    %c78 = arith.constant 78 : index
    %242 = memref.load %arg1[%c78] : memref<87xf32, #tpu.memory_space<smem>>
    %243 = vector.broadcast %242 : f32 to vector<1x128xf32>
    %c54 = arith.constant 54 : index
    %244 = memref.load %arg1[%c54] : memref<87xf32, #tpu.memory_space<smem>>
    %245 = vector.broadcast %244 : f32 to vector<1x128xf32>
    %246 = arith.mulf %245, %46 : vector<1x128xf32>
    %247 = arith.addf %243, %246 : vector<1x128xf32>
    %c58 = arith.constant 58 : index
    %248 = memref.load %arg1[%c58] : memref<87xf32, #tpu.memory_space<smem>>
    %249 = vector.broadcast %248 : f32 to vector<1x128xf32>
    %250 = arith.mulf %249, %85 : vector<1x128xf32>
    %251 = arith.addf %247, %250 : vector<1x128xf32>
    %c62 = arith.constant 62 : index
    %252 = memref.load %arg1[%c62] : memref<87xf32, #tpu.memory_space<smem>>
    %253 = vector.broadcast %252 : f32 to vector<1x128xf32>
    %254 = arith.mulf %253, %124 : vector<1x128xf32>
    %255 = arith.addf %251, %254 : vector<1x128xf32>
    %c66 = arith.constant 66 : index
    %256 = memref.load %arg1[%c66] : memref<87xf32, #tpu.memory_space<smem>>
    %257 = vector.broadcast %256 : f32 to vector<1x128xf32>
    %258 = arith.mulf %257, %163 : vector<1x128xf32>
    %259 = arith.addf %255, %258 : vector<1x128xf32>
    %c70 = arith.constant 70 : index
    %260 = memref.load %arg1[%c70] : memref<87xf32, #tpu.memory_space<smem>>
    %261 = vector.broadcast %260 : f32 to vector<1x128xf32>
    %262 = arith.mulf %261, %202 : vector<1x128xf32>
    %263 = arith.addf %259, %262 : vector<1x128xf32>
    %c74 = arith.constant 74 : index
    %264 = memref.load %arg1[%c74] : memref<87xf32, #tpu.memory_space<smem>>
    %265 = vector.broadcast %264 : f32 to vector<1x128xf32>
    %266 = arith.mulf %265, %241 : vector<1x128xf32>
    %267 = arith.addf %263, %266 : vector<1x128xf32>
    %268 = arith.negf %267 : vector<1x128xf32>
    %269 = math.exp %268 : vector<1x128xf32>
    %cst_21 = arith.constant 1.000000e+00 : f32
    %270 = vector.broadcast %cst_21 : f32 to vector<1x128xf32>
    %271 = arith.addf %270, %269 : vector<1x128xf32>
    %272 = arith.divf %270, %271 : vector<1x128xf32>
    %c79 = arith.constant 79 : index
    %273 = memref.load %arg1[%c79] : memref<87xf32, #tpu.memory_space<smem>>
    %274 = vector.broadcast %273 : f32 to vector<1x128xf32>
    %c55 = arith.constant 55 : index
    %275 = memref.load %arg1[%c55] : memref<87xf32, #tpu.memory_space<smem>>
    %276 = vector.broadcast %275 : f32 to vector<1x128xf32>
    %277 = arith.mulf %276, %46 : vector<1x128xf32>
    %278 = arith.addf %274, %277 : vector<1x128xf32>
    %c59 = arith.constant 59 : index
    %279 = memref.load %arg1[%c59] : memref<87xf32, #tpu.memory_space<smem>>
    %280 = vector.broadcast %279 : f32 to vector<1x128xf32>
    %281 = arith.mulf %280, %85 : vector<1x128xf32>
    %282 = arith.addf %278, %281 : vector<1x128xf32>
    %c63 = arith.constant 63 : index
    %283 = memref.load %arg1[%c63] : memref<87xf32, #tpu.memory_space<smem>>
    %284 = vector.broadcast %283 : f32 to vector<1x128xf32>
    %285 = arith.mulf %284, %124 : vector<1x128xf32>
    %286 = arith.addf %282, %285 : vector<1x128xf32>
    %c67 = arith.constant 67 : index
    %287 = memref.load %arg1[%c67] : memref<87xf32, #tpu.memory_space<smem>>
    %288 = vector.broadcast %287 : f32 to vector<1x128xf32>
    %289 = arith.mulf %288, %163 : vector<1x128xf32>
    %290 = arith.addf %286, %289 : vector<1x128xf32>
    %c71 = arith.constant 71 : index
    %291 = memref.load %arg1[%c71] : memref<87xf32, #tpu.memory_space<smem>>
    %292 = vector.broadcast %291 : f32 to vector<1x128xf32>
    %293 = arith.mulf %292, %202 : vector<1x128xf32>
    %294 = arith.addf %290, %293 : vector<1x128xf32>
    %c75 = arith.constant 75 : index
    %295 = memref.load %arg1[%c75] : memref<87xf32, #tpu.memory_space<smem>>
    %296 = vector.broadcast %295 : f32 to vector<1x128xf32>
    %297 = arith.mulf %296, %241 : vector<1x128xf32>
    %298 = arith.addf %294, %297 : vector<1x128xf32>
    %299 = arith.negf %298 : vector<1x128xf32>
    %300 = math.exp %299 : vector<1x128xf32>
    %cst_22 = arith.constant 1.000000e+00 : f32
    %301 = vector.broadcast %cst_22 : f32 to vector<1x128xf32>
    %302 = arith.addf %301, %300 : vector<1x128xf32>
    %303 = arith.divf %301, %302 : vector<1x128xf32>
    %c80 = arith.constant 80 : index
    %304 = memref.load %arg1[%c80] : memref<87xf32, #tpu.memory_space<smem>>
    %305 = vector.broadcast %304 : f32 to vector<1x128xf32>
    %c56 = arith.constant 56 : index
    %306 = memref.load %arg1[%c56] : memref<87xf32, #tpu.memory_space<smem>>
    %307 = vector.broadcast %306 : f32 to vector<1x128xf32>
    %308 = arith.mulf %307, %46 : vector<1x128xf32>
    %309 = arith.addf %305, %308 : vector<1x128xf32>
    %c60 = arith.constant 60 : index
    %310 = memref.load %arg1[%c60] : memref<87xf32, #tpu.memory_space<smem>>
    %311 = vector.broadcast %310 : f32 to vector<1x128xf32>
    %312 = arith.mulf %311, %85 : vector<1x128xf32>
    %313 = arith.addf %309, %312 : vector<1x128xf32>
    %c64 = arith.constant 64 : index
    %314 = memref.load %arg1[%c64] : memref<87xf32, #tpu.memory_space<smem>>
    %315 = vector.broadcast %314 : f32 to vector<1x128xf32>
    %316 = arith.mulf %315, %124 : vector<1x128xf32>
    %317 = arith.addf %313, %316 : vector<1x128xf32>
    %c68 = arith.constant 68 : index
    %318 = memref.load %arg1[%c68] : memref<87xf32, #tpu.memory_space<smem>>
    %319 = vector.broadcast %318 : f32 to vector<1x128xf32>
    %320 = arith.mulf %319, %163 : vector<1x128xf32>
    %321 = arith.addf %317, %320 : vector<1x128xf32>
    %c72 = arith.constant 72 : index
    %322 = memref.load %arg1[%c72] : memref<87xf32, #tpu.memory_space<smem>>
    %323 = vector.broadcast %322 : f32 to vector<1x128xf32>
    %324 = arith.mulf %323, %202 : vector<1x128xf32>
    %325 = arith.addf %321, %324 : vector<1x128xf32>
    %c76 = arith.constant 76 : index
    %326 = memref.load %arg1[%c76] : memref<87xf32, #tpu.memory_space<smem>>
    %327 = vector.broadcast %326 : f32 to vector<1x128xf32>
    %328 = arith.mulf %327, %241 : vector<1x128xf32>
    %329 = arith.addf %325, %328 : vector<1x128xf32>
    %330 = arith.negf %329 : vector<1x128xf32>
    %331 = math.exp %330 : vector<1x128xf32>
    %cst_23 = arith.constant 1.000000e+00 : f32
    %332 = vector.broadcast %cst_23 : f32 to vector<1x128xf32>
    %333 = arith.addf %332, %331 : vector<1x128xf32>
    %334 = arith.divf %332, %333 : vector<1x128xf32>
    %c81 = arith.constant 81 : index
    %335 = memref.load %arg1[%c81] : memref<87xf32, #tpu.memory_space<smem>>
    %336 = vector.broadcast %335 : f32 to vector<1x128xf32>
    %c57 = arith.constant 57 : index
    %337 = memref.load %arg1[%c57] : memref<87xf32, #tpu.memory_space<smem>>
    %338 = vector.broadcast %337 : f32 to vector<1x128xf32>
    %339 = arith.mulf %338, %46 : vector<1x128xf32>
    %340 = arith.addf %336, %339 : vector<1x128xf32>
    %c61 = arith.constant 61 : index
    %341 = memref.load %arg1[%c61] : memref<87xf32, #tpu.memory_space<smem>>
    %342 = vector.broadcast %341 : f32 to vector<1x128xf32>
    %343 = arith.mulf %342, %85 : vector<1x128xf32>
    %344 = arith.addf %340, %343 : vector<1x128xf32>
    %c65 = arith.constant 65 : index
    %345 = memref.load %arg1[%c65] : memref<87xf32, #tpu.memory_space<smem>>
    %346 = vector.broadcast %345 : f32 to vector<1x128xf32>
    %347 = arith.mulf %346, %124 : vector<1x128xf32>
    %348 = arith.addf %344, %347 : vector<1x128xf32>
    %c69 = arith.constant 69 : index
    %349 = memref.load %arg1[%c69] : memref<87xf32, #tpu.memory_space<smem>>
    %350 = vector.broadcast %349 : f32 to vector<1x128xf32>
    %351 = arith.mulf %350, %163 : vector<1x128xf32>
    %352 = arith.addf %348, %351 : vector<1x128xf32>
    %c73 = arith.constant 73 : index
    %353 = memref.load %arg1[%c73] : memref<87xf32, #tpu.memory_space<smem>>
    %354 = vector.broadcast %353 : f32 to vector<1x128xf32>
    %355 = arith.mulf %354, %202 : vector<1x128xf32>
    %356 = arith.addf %352, %355 : vector<1x128xf32>
    %c77 = arith.constant 77 : index
    %357 = memref.load %arg1[%c77] : memref<87xf32, #tpu.memory_space<smem>>
    %358 = vector.broadcast %357 : f32 to vector<1x128xf32>
    %359 = arith.mulf %358, %241 : vector<1x128xf32>
    %360 = arith.addf %356, %359 : vector<1x128xf32>
    %361 = arith.negf %360 : vector<1x128xf32>
    %362 = math.exp %361 : vector<1x128xf32>
    %cst_24 = arith.constant 1.000000e+00 : f32
    %363 = vector.broadcast %cst_24 : f32 to vector<1x128xf32>
    %364 = arith.addf %363, %362 : vector<1x128xf32>
    %365 = arith.divf %363, %364 : vector<1x128xf32>
    %c86 = arith.constant 86 : index
    %366 = memref.load %arg1[%c86] : memref<87xf32, #tpu.memory_space<smem>>
    %367 = vector.broadcast %366 : f32 to vector<1x128xf32>
    %c82 = arith.constant 82 : index
    %368 = memref.load %arg1[%c82] : memref<87xf32, #tpu.memory_space<smem>>
    %369 = vector.broadcast %368 : f32 to vector<1x128xf32>
    %370 = arith.mulf %369, %272 : vector<1x128xf32>
    %371 = arith.addf %367, %370 : vector<1x128xf32>
    %c83 = arith.constant 83 : index
    %372 = memref.load %arg1[%c83] : memref<87xf32, #tpu.memory_space<smem>>
    %373 = vector.broadcast %372 : f32 to vector<1x128xf32>
    %374 = arith.mulf %373, %303 : vector<1x128xf32>
    %375 = arith.addf %371, %374 : vector<1x128xf32>
    %c84 = arith.constant 84 : index
    %376 = memref.load %arg1[%c84] : memref<87xf32, #tpu.memory_space<smem>>
    %377 = vector.broadcast %376 : f32 to vector<1x128xf32>
    %378 = arith.mulf %377, %334 : vector<1x128xf32>
    %379 = arith.addf %375, %378 : vector<1x128xf32>
    %c85 = arith.constant 85 : index
    %380 = memref.load %arg1[%c85] : memref<87xf32, #tpu.memory_space<smem>>
    %381 = vector.broadcast %380 : f32 to vector<1x128xf32>
    %382 = arith.mulf %381, %365 : vector<1x128xf32>
    %383 = arith.addf %379, %382 : vector<1x128xf32>
    %384 = arith.negf %383 : vector<1x128xf32>
    %385 = math.exp %384 : vector<1x128xf32>
    %cst_25 = arith.constant 1.000000e+00 : f32
    %386 = vector.broadcast %cst_25 : f32 to vector<1x128xf32>
    %387 = arith.addf %386, %385 : vector<1x128xf32>
    %388 = arith.divf %386, %387 : vector<1x128xf32>
    %c0_26 = arith.constant 0 : index
    %c0_27 = arith.constant 0 : index
    %389 = vector.load %arg3[%c0_26, %c0_27] : memref<1x128xf32, #tpu.memory_space<vmem>>, vector<1x128xf32>
    tpu.vector_store %arg3[%c0_26, %c0_27], %388 {strides = array<i32>} : memref<1x128xf32, #tpu.memory_space<vmem>>, vector<1x128xf32>,
    return
  }
  func.func @transform_0(%arg0: i32) -> i32 {
    %c0_i32 = arith.constant 0 : i32
    %c0_i32_0 = arith.constant 0 : i32
    return %c0_i32 : i32
  }
  func.func @transform_1(%arg0: i32) -> (i32, i32) {
    %c0_i32 = arith.constant 0 : i32
    %c0_i32_0 = arith.constant 0 : i32
    return %c0_i32, %arg0 : i32, i32
  }
  func.func @transform_2(%arg0: i32) -> (i32, i32) {
    %c0_i32 = arith.constant 0 : i32
    %c0_i32_0 = arith.constant 0 : i32
    return %c0_i32, %arg0 : i32, i32
  }
}

</mosaic_0001>

<bundles_post_ra>
// kernel: tpu_custom_call.1
= control target key start
LH: loop header
LB: loop body
LE: loop exit
PB: predicated region body
PF: predicated region fallthrough
CT: control target
= control target key end

     0   :  { %7 = vsyncpa [#allocation5], 0  ;;  %s1301_s0 = inlined_call_operand.hbm [shape: f32[87], index: 0, kind: input, shape index: {}]   ;;  %s1302_s1 = inlined_call_operand.hbm [shape: f32[8,128], index: 1, kind: input, shape index: {}]   ;;  %s1303_s2 = inlined_call_operand.hbm [shape: f32[1,128], index: 2, kind: output, shape index: {}]  }
   0x1   :  { %8 = vsyncpa [#allocation3], 0 }
   0x2   :  { %9 = vsyncpa [#allocation4], 0  ;;  %s15_s11 = sshll.u32 %s1301_s0, 4  ;;  %s24_s14 = sshll.u32 %s1302_s1, 4  ;;  %s16_s11 = int_to_ptr.hbm [resolvable:$true] %s15_s11  ;;  %s25_s14 = int_to_ptr.hbm [resolvable:$true] %s24_s14 }
   0x3   :  { %s811_s15 = smov [#allocation2]   ;;  %s812_s16 = smov [#allocation6]  }
   0x4   :  { %18 = dma.hbm_to_smem %s16_s11, 16, %s811_s15, [#allocation5]  }
   0x5   :  { %s26_s17 = sshll.u32 %s812_s16, 4  ;;  %s27_s17 = int_to_ptr.vmem [resolvable:$true] %s26_s17 }
   0x6   :  { %29 = dma.hbm_to_vmem [thread:$0]  %s25_s14, 128, %s27_s17, [#allocation3]  }
   0x7   :  { %805 = dma.done.wait [#allocation5], 16  }
   0x8   :  { %806 = vsyncadd [#allocation5], 4294967280 }
   0x9   :  { %807 = dma.done.wait [#allocation3], 128  }
   0xa   :  { %808 = vsyncadd [#allocation3], 4294967168 }
   0xb   :  { %38 = sfence }
   0xc   :  { %s601_s18 = sld [smem:[#allocation2 + $0x30]]  ;;  %v835_v0 = vld [vmem:[#allocation6] sm:$0x1]  ;;  %v837_v1 = vld [vmem:[#allocation6 + $0x1] sm:$0x1] }
   0xd   :  { %s49_s19 = sld [smem:[#allocation2]]  ;;  %v841_v2 = vld [vmem:[#allocation6 + $0x2] sm:$0x1]  ;;  %v848_v7 = vld [vmem:[#allocation6 + $0x3] sm:$0x1] }
   0xe   :  { %s602_s0 = sld [smem:[#allocation2 + $0x6]]  ;;  %v854_v13 = vld [vmem:[#allocation6 + $0x4] sm:$0x1]  ;;  %v857_v17 = vld [vmem:[#allocation6 + $0x5] sm:$0x1] }
   0xf   :  { %s603_s20 = sld [smem:[#allocation2 + $0xc]]  ;;  %v865_v21 = vld [vmem:[#allocation6 + $0x6] sm:$0x1]  ;;  %v874_v27 = vld [vmem:[#allocation6 + $0x7] sm:$0x1] }
  0x10   :  { %s604_s21 = sld [smem:[#allocation2 + $0x12]] }
  0x11   :  { %s605_s1 = sld [smem:[#allocation2 + $0x18]] }
  0x12   :  { %s839_s22 = sld [smem:[#allocation2 + $0x1e]]  ;;  %v48_v3 = vstv %s601_s18 }
  0x13   :  { %v50_v4 = vstv %s49_s19  ;;  %s843_s23 = sld [smem:[#allocation2 + $0x24]] }
  0x14   :  { %v51_v5 = vmul.f32 %v50_v4, %v835_v0  ;;  %v54_v6 = vstv %s602_s0  ;;  %s846_s24 = sld [smem:[#allocation2 + $0x2a]] }
  0x15   :  { %v55_v8 = vmul.f32 %v54_v6, %v837_v1  ;;  %v58_v9 = vstv %s603_s20  ;;  %s851_s25 = sld [smem:[#allocation2 + $0x31]] }
  0x16   :  { %v52_v10 = vadd.f32 %v51_v5, %v48_v3  ;;  %v59_v11 = vmul.f32 %v58_v9, %v841_v2  ;;  %v62_v12 = vstv %s604_s21  ;;  %s611_s26 = sld [smem:[#allocation2 + $0x1]] }
  0x17   :  { %v66_v14 = vstv %s605_s1  ;;  %s612_s27 = sld [smem:[#allocation2 + $0x7]]  ;;  %v63_v16 = vmul.f32 %v62_v12, %v848_v7 }
  0x18   :  { %v56_v15 = vadd.f32 %v55_v8, %v52_v10  ;;  %s613_s28 = sld [smem:[#allocation2 + $0xd]]  ;;  %v70_v18 = vstv %s839_s22  ;;  %v67_v20 = vmul.f32 %v66_v14, %v854_v13 }
  0x19   :  { %s860_s29 = sld [smem:[#allocation2 + $0x13]]  ;;  %v74_v22 = vstv %s843_s23  ;;  %v71_v24 = vmul.f32 %v70_v18, %v857_v17 }
  0x1a   :  { %v60_v19 = vadd.f32 %v59_v11, %v56_v15  ;;  %s863_s30 = sld [smem:[#allocation2 + $0x19]]  ;;  %v78_v28 = vstv %s846_s24  ;;  %v75_v32 = vmul.f32 %v74_v22, %v865_v21 }
  0x1b   :  { %s868_s3 = sld [smem:[#allocation2 + $0x1f]]  ;;  %v101_v25 = vstv %s851_s25  ;;  %v79_v39 = vmul.f32 %v78_v28, %v874_v27 }
  0x1c   :  { %v64_v23 = vadd.f32 %v63_v16, %v60_v19  ;;  %v103_v26 = vstv %s611_s26  ;;  %s872_s4 = sld [smem:[#allocation2 + $0x25]] }
  0x1d   :  { %v104_v29 = vmul.f32 %v103_v26, %v835_v0  ;;  %v107_v30 = vstv %s612_s27  ;;  %s878_s5 = sld [smem:[#allocation2 + $0x2b]] }
  0x1e   :  { %v68_v31 = vadd.f32 %v67_v20, %v64_v23  ;;  %v108_v33 = vmul.f32 %v107_v30, %v837_v1  ;;  %v111_v34 = vstv %s613_s28  ;;  %s882_s6 = sld [smem:[#allocation2 + $0x32]] }
  0x1f   :  { %v105_v35 = vadd.f32 %v104_v29, %v101_v25  ;;  %v112_v36 = vmul.f32 %v111_v34, %v841_v2  ;;  %v115_v37 = vstv %s860_s29  ;;  %s621_s7 = sld [smem:[#allocation2 + $0x2]] }
  0x20   :  { %v72_v38 = vadd.f32 %v71_v24, %v68_v31  ;;  %v119_v40 = vstv %s863_s30  ;;  %s622_s8 = sld [smem:[#allocation2 + $0x8]]  ;;  %v116_v42 = vmul.f32 %v115_v37, %v848_v7 }
  0x21   :  { %v109_v41 = vadd.f32 %v108_v33, %v105_v35  ;;  %s623_s9 = sld [smem:[#allocation2 + $0xe]]  ;;  %v123_v44 = vstv %s868_s3  ;;  %v120_v46 = vmul.f32 %v119_v40, %v854_v13 }
  0x22   :  { %v76_v43 = vadd.f32 %v75_v32, %v72_v38  ;;  %s890_s10 = sld [smem:[#allocation2 + $0x14]]  ;;  %v127_v48 = vstv %s872_s4  ;;  %v124_v50 = vmul.f32 %v123_v44, %v857_v17 }
  0x23   :  { %v113_v45 = vadd.f32 %v112_v36, %v109_v41  ;;  %s893_s11 = sld [smem:[#allocation2 + $0x1a]]  ;;  %v131_v54 = vstv %s878_s5  ;;  %v128_v58 = vmul.f32 %v127_v48, %v865_v21 }
  0x24   :  { %v80_v47 = vadd.f32 %v79_v39, %v76_v43  ;;  %s896_s12 = sld [smem:[#allocation2 + $0x20]]  ;;  %v154_v51 = vstv %s882_s6  ;;  %v132_v4 = vmul.f32 %v131_v54, %v874_v27 }
  0x25   :  { %v117_v49 = vadd.f32 %v116_v42, %v113_v45  ;;  %v156_v52 = vstv %s621_s7  ;;  %s900_s13 = sld [smem:[#allocation2 + $0x26]] }
  0x26   :  { %v609_v53 = vmul.f32 -1.442695, %v80_v47  ;;  %v157_v55 = vmul.f32 %v156_v52, %v835_v0  ;;  %v160_v56 = vstv %s622_s8  ;;  %s904_s14 = sld [smem:[#allocation2 + $0x2c]] }
  0x27   :  { %v121_v57 = vadd.f32 %v120_v46, %v117_v49  ;;  %v161_v59 = vmul.f32 %v160_v56, %v837_v1  ;;  %v164_v60 = vstv %s623_s9  ;;  %s908_s15 = sld [smem:[#allocation2 + $0x33]] }
  0x28   :  { %701 = vpow2.f32 %v609_v53  ;;  %v158_v61 = vadd.f32 %v157_v55, %v154_v51  ;;  %v165_v62 = vmul.f32 %v164_v60, %v841_v2  ;;  %v168_v63 = vstv %s890_s10  ;;  %s631_s16 = sld [smem:[#allocation2 + $0x3]] }
  0x29   :  { %v125_v3 = vadd.f32 %v124_v50, %v121_v57  ;;  %v172_v5 = vstv %s893_s11  ;;  %s632_s17 = sld [smem:[#allocation2 + $0x9]]  ;;  %v169_v8 = vmul.f32 %v168_v63, %v848_v7 }
  0x2a   :  { %v162_v6 = vadd.f32 %v161_v59, %v158_v61  ;;  %s915_s18 = sld [smem:[#allocation2 + $0xf]]  ;;  %v176_v10 = vstv %s896_s12  ;;  %v173_v12 = vmul.f32 %v172_v5, %v854_v13 }
  0x2b   :  { %v129_v9 = vadd.f32 %v128_v58, %v125_v3  ;;  %s918_s19 = sld [smem:[#allocation2 + $0x15]]  ;;  %v180_v15 = vstv %s900_s13  ;;  %v177_v19 = vmul.f32 %v176_v10, %v857_v17 }
  0x2c   :  { %v166_v11 = vadd.f32 %v165_v62, %v162_v6  ;;  %s921_s0 = sld [smem:[#allocation2 + $0x1b]]  ;;  %v184_v20 = vstv %s904_s14  ;;  %v181_v29 = vmul.f32 %v180_v15, %v865_v21 }
  0x2d   :  { %v133_v14 = vadd.f32 %v132_v4, %v129_v9  ;;  %s924_s20 = sld [smem:[#allocation2 + $0x21]]  ;;  %v207_v24 = vstv %s908_s15  ;;  %v185_v33 = vmul.f32 %v184_v20, %v874_v27 }
  0x2e   :  { %v702_v16 = vpop.eup %701  ;;  %v170_v18 = vadd.f32 %v169_v8, %v166_v11  ;;  %v209_v22 = vstv %s631_s16  ;;  %s928_s21 = sld [smem:[#allocation2 + $0x27]] }
  0x2f   :  { %v619_v23 = vmul.f32 -1.442695, %v133_v14  ;;  %v210_v25 = vmul.f32 %v209_v22, %v835_v0  ;;  %v213_v26 = vstv %s632_s17  ;;  %s932_s1 = sld [smem:[#allocation2 + $0x2d]]  ;;  %v939_v32 = vadd.f32 1.0, %v702_v16 }
  0x30   :  { %v174_v28 = vadd.f32 %v173_v12, %v170_v18  ;;  %v214_v30 = vmul.f32 %v213_v26, %v837_v1  ;;  %v217_v31 = vstv %s915_s18  ;;  %s937_s22 = sld [smem:[#allocation2 + $0x34]] }
  0x31   :  { %s641_s23 = sld [smem:[#allocation2 + $0x4]]  ;;  %703 = vpow2.f32 %v619_v23  ;;  %v211_v35 = vadd.f32 %v210_v25, %v207_v24  ;;  %v218_v36 = vmul.f32 %v217_v31, %v841_v2  ;;  %v221_v37 = vstv %s918_s19 }
  0x32   :  { %v178_v34 = vadd.f32 %v177_v19, %v174_v28  ;;  %s943_s24 = sld [smem:[#allocation2 + $0xa]]  ;;  %v225_v38 = vstv %s921_s0  ;;  %v222_v41 = vmul.f32 %v221_v37, %v848_v7  ;;  %705 = vrcp.f32 %v939_v32 }
  0x33   :  { %s947_s25 = sld [smem:[#allocation2 + $0x10]]  ;;  %v215_v40 = vadd.f32 %v214_v30, %v211_v35  ;;  %v229_v42 = vstv %s924_s20  ;;  %v226_v45 = vmul.f32 %v225_v38, %v854_v13  ;;  %vm90_vm0 = vweird.f32 %v939_v32 }
  0x34   :  { %v182_v39 = vadd.f32 %v181_v29, %v178_v34  ;;  %s950_s26 = sld [smem:[#allocation2 + $0x16]]  ;;  %v233_v46 = vstv %s928_s21  ;;  %v230_v52 = vmul.f32 %v229_v42, %v857_v17 }
  0x35   :  { %s954_s27 = sld [smem:[#allocation2 + $0x1c]]  ;;  %v219_v44 = vadd.f32 %v218_v36, %v215_v40  ;;  %v237_v47 = vstv %s932_s1  ;;  %v234_v59 = vmul.f32 %v233_v46, %v865_v21 }
  0x36   :  { %v186_v43 = vadd.f32 %v185_v33, %v182_v39  ;;  %s959_s28 = sld [smem:[#allocation2 + $0x22]]  ;;  %v260_v53 = vstv %s937_s22  ;;  %v238_v63 = vmul.f32 %v237_v47, %v874_v27  ;;  %v96_v33 = vand.u32 2147483648, %v939_v32 }
  0x37   :  { %v262_v48 = vstv %s641_s23  ;;  %v704_v49 = vpop.eup %703  ;;  %v223_v51 = vadd.f32 %v222_v41, %v219_v44  ;;  %s968_s29 = sld [smem:[#allocation2 + $0x28]]  ;;  %v94_v47 = vand.u32 2147483647, %v939_v32 }
  0x38   :  { %v629_v50 = vmul.f32 -1.442695, %v186_v43  ;;  %v963_v54 = vadd.f32 1.0, %v704_v49  ;;  %v263_v55 = vmul.f32 %v262_v48, %v835_v0  ;;  %v266_v56 = vstv %s943_s24  ;;  %s972_s30 = sld [smem:[#allocation2 + $0x2e]]  ;;  %v974_v61 = vpop.eup %705 }
  0x39   :  { %v270_v57 = vstv %s947_s25  ;;  %v227_v58 = vadd.f32 %v226_v45, %v223_v51  ;;  %v267_v60 = vmul.f32 %v266_v56, %v837_v1  ;;  %s977_s3 = sld [smem:[#allocation2 + $0x35]]  ;;  %v86_v8 = vmul.f32 %v974_v61, %v939_v32 }
  0x3a   :  { %707 = vpow2.f32 %v629_v50  ;;  %v264_v3 = vadd.f32 %v263_v55, %v260_v53  ;;  %v271_v4 = vmul.f32 %v270_v57, %v841_v2  ;;  %s981_s4 = sld [smem:[#allocation2 + $0x5]]  ;;  %v274_v5 = vstv %s950_s26 }
  0x3b   :  { %709 = vrcp.f32 %v963_v54  ;;  %v231_v62 = vadd.f32 %v230_v52, %v227_v58  ;;  %v278_v6 = vstv %s954_s27  ;;  %s985_s5 = sld [smem:[#allocation2 + $0xb]]  ;;  %v275_v11 = vmul.f32 %v274_v5, %v848_v7 }
  0x3c   :  { %v268_v10 = vadd.f32 %v267_v60, %v264_v3  ;;  %v282_v12 = vstv %s959_s28  ;;  %s991_s6 = sld [smem:[#allocation2 + $0x11]]  ;;  %v279_v18 = vmul.f32 %v278_v6, %v854_v13  ;;  %v87_v23 = vsub.f32 1.0, %v86_v8 }
  0x3d   :  { %v235_v9 = vadd.f32 %v234_v59, %v231_v62  ;;  %v286_v22 = vstv %s968_s29  ;;  %s999_s7 = sld [smem:[#allocation2 + $0x17]]  ;;  %v283_v26 = vmul.f32 %v282_v12, %v857_v17  ;;  %vm91_vm1 = vweird.f32 %v974_v61 }
  0x3e   :  { %v272_v16 = vadd.f32 %v271_v4, %v268_v10  ;;  %v290_v29 = vstv %s972_s30  ;;  %s1006_s8 = sld [smem:[#allocation2 + $0x1d]]  ;;  %v287_v31 = vmul.f32 %v286_v22, %v865_v21  ;;  %v88_v37 = vmul.f32 %v974_v61, %v87_v23  ;;  %vm1040_vm2 = vmor %vm90_vm0, %vm91_vm1 }
  0x3f   :  { %v239_v15 = vadd.f32 %v238_v63, %v235_v9  ;;  %v313_v34 = vstv %s977_s3  ;;  %s1013_s9 = sld [smem:[#allocation2 + $0x23]]  ;;  %v291_v39 = vmul.f32 %v290_v29, %v874_v27  ;;  %v97_v48 = vor.u32 1.1754944e-38, %v96_v33 }
  0x40   :  { %v708_v14 = vpop.eup %707  ;;  %v276_v25 = vadd.f32 %v275_v11, %v272_v16  ;;  %v315_v35 = vstv %s981_s4  ;;  %s1020_s10 = sld [smem:[#allocation2 + $0x29]]  ;;  %vm143_vm3 = vweird.f32 %v963_v54  ;;  %v147_v59 = vand.u32 2147483647, %v963_v54 }
  0x41   :  { %v994_v19 = vpop.eup %709  ;;  %v996_v20 = vadd.f32 1.0, %v708_v14  ;;  %v639_v24 = vmul.f32 -1.442695, %v239_v15  ;;  %v319_v36 = vstv %s985_s5  ;;  %v316_v40 = vmul.f32 %v315_v35, %v835_v0  ;;  %s1028_s11 = sld [smem:[#allocation2 + $0x2f]] }
  0x42   :  { %v139_v28 = vmul.f32 %v994_v19, %v963_v54  ;;  %v280_v30 = vadd.f32 %v279_v18, %v276_v25  ;;  %v320_v42 = vmul.f32 %v319_v36, %v837_v1  ;;  %v323_v43 = vstv %s991_s6  ;;  %s1047_s12 = sld [smem:[#allocation2 + $0x36]] }
  0x43   :  { %711 = vrcp.f32 %v996_v20  ;;  %v317_v45 = vadd.f32 %v316_v40, %v313_v34  ;;  %v327_v49 = vstv %s999_s7  ;;  %v89_v1 = vadd.f32 %v974_v61, %v88_v37  ;;  %s1054_s13 = sld [smem:[#allocation2 + $0x4e]] }
  0x44   :  { %713 = vpow2.f32 %v639_v24  ;;  %v284_v38 = vadd.f32 %v283_v26, %v280_v30  ;;  %v140_v41 = vsub.f32 1.0, %v139_v28  ;;  %v324_v52 = vmul.f32 %v323_v43, %v841_v2  ;;  %s1061_s14 = sld [smem:[#allocation2 + $0x3a]] }
  0x45   :  { %v321_v56 = vadd.f32 %v320_v42, %v317_v45  ;;  %v331_v57 = vstv %s1006_s8  ;;  %v328_v2 = vmul.f32 %v327_v49, %v848_v7  ;;  %vm144_vm4 = vweird.f32 %v994_v19  ;;  %s1070_s15 = sld [smem:[#allocation2 + $0x37]] }
  0x46   :  { %v288_v44 = vadd.f32 %v287_v31, %v284_v38  ;;  %v141_v53 = vmul.f32 %v994_v19, %v140_v41  ;;  %v335_v32 = vstv %s1013_s9  ;;  %v149_v63 = vand.u32 2147483648, %v963_v54  ;;  %vm1065_vm6 = vmor %vm143_vm3, %vm144_vm4  ;;  %s1078_s16 = sld [smem:[#allocation2 + $0x3e]] }
  0x47   :  { %v325_v3 = vadd.f32 %v324_v52, %v321_v56  ;;  %v332_v4 = vmul.f32 %v331_v57, %v854_v13  ;;  %v93_v7 = vsel %vm1040_vm2, %v974_v61, %v89_v1  ;;  %vm95_vm5 = vcmp.eq.f32.partialorder %v94_v47, 8.507059e+37  ;;  %s1083_s17 = sld [smem:[#allocation2 + $0x4f]] }
  0x48   :  { %v292_v51 = vadd.f32 %v291_v39, %v288_v44  ;;  %v142_v5 = vadd.f32 %v994_v19, %v141_v53  ;;  %v339_v6 = vstv %s1020_s10  ;;  %v336_v13 = vmul.f32 %v335_v32, %v857_v17  ;;  %s1093_s18 = sld [smem:[#allocation2 + $0x3b]] }
  0x49   :  { %v1023_v46 = vpop.eup %711  ;;  %v329_v9 = vadd.f32 %v328_v2, %v325_v3  ;;  %vm1072_vm7 = vcmp.eq.f32.partialorder %v147_v59, 8.507059e+37  ;;  %v343_v11 = vstv %s1028_s11  ;;  %v1080_v54 = vsel %vm95_vm5, %v97_v48, %v93_v7  ;;  %s1099_s19 = sld [smem:[#allocation2 + $0x38]] }
  0x4a   :  { %v714_v0 = vpop.eup %713  ;;  %v192_v50 = vmul.f32 %v1023_v46, %v996_v20  ;;  %v649_v60 = vmul.f32 -1.442695, %v292_v51  ;;  %v150_v12 = vor.u32 1.1754944e-38, %v149_v63  ;;  %v340_v15 = vmul.f32 %v339_v6, %v865_v21  ;;  %s1105_s0 = sld [smem:[#allocation2 + $0x50]] }
  0x4b   :  { %v1035_v55 = vadd.f32 1.0, %v714_v0  ;;  %v333_v14 = vadd.f32 %v332_v4, %v329_v9  ;;  %v146_v16 = vsel %vm1065_vm6, %v994_v19, %v142_v5  ;;  %vm196_vm8 = vweird.f32 %v996_v20  ;;  %s1111_s20 = sld [smem:[#allocation2 + $0x3c]] }
  0x4c   :  { %v193_v62 = vsub.f32 1.0, %v192_v50  ;;  %vm197_vm9 = vweird.f32 %v1023_v46  ;;  %v202_v18 = vand.u32 2147483648, %v996_v20  ;;  %v344_v24 = vmul.f32 %v343_v11, %v874_v27  ;;  %s1119_s21 = sld [smem:[#allocation2 + $0x51]] }
  0x4d   :  { %715 = vrcp.f32 %v1035_v55  ;;  %v337_v23 = vadd.f32 %v336_v13, %v333_v14  ;;  %v368_v25 = vstv %s1047_s12  ;;  %v200_v26 = vand.u32 2147483647, %v996_v20  ;;  %vm1107_vm10 = vmor %vm196_vm8, %vm197_vm9  ;;  %s1124_s1 = sld [smem:[#allocation2 + $0x39]] }
  0x4e   :  { %717 = vpow2.f32 %v649_v60  ;;  %v194_v61 = vmul.f32 %v1023_v46, %v193_v62  ;;  %v1115_v31 = vsel %vm1072_vm7, %v150_v12, %v146_v16  ;;  %v203_v33 = vor.u32 1.1754944e-38, %v202_v18  ;;  %s1131_s22 = sld [smem:[#allocation2 + $0x3d]] }
  0x4f   :  { %v341_v27 = vadd.f32 %v340_v15, %v337_v23  ;;  %v369_v20 = vmul.f32 %v368_v25, %v1080_v54  ;;  %v366_v35 = vstv %s1054_s13  ;;  %v372_v36 = vstv %s1061_s14  ;;  %s1136_s23 = sld [smem:[#allocation2 + $0x42]] }
  0x50   :  { %v195_v19 = vadd.f32 %v1023_v46, %v194_v61  ;;  %v413_v37 = vstv %s1070_s15  ;;  %vm201_vm11 = vcmp.eq.f32.partialorder %v200_v26, 8.507059e+37  ;;  %vm249_vm12 = vweird.f32 %v1035_v55  ;;  %s1141_s24 = sld [smem:[#allocation2 + $0x3f]]  ;;  %s813_s15 = smov [#allocation7]  }
  0x51   :  { %v345_v34 = vadd.f32 %v344_v24, %v341_v27  ;;  %v253_v39 = vand.u32 2147483647, %v1035_v55  ;;  %v255_v41 = vand.u32 2147483648, %v1035_v55  ;;  %v376_v43 = vstv %s1078_s16  ;;  %s1145_s25 = sld [smem:[#allocation2 + $0x40]]  ;;  %s588_s16 = sshll.u32 %s813_s15, 4  ;;  %s589_s16 = int_to_ptr.vmem [resolvable:$true] %s588_s16 }
  0x52   :  { %v199_v38 = vsel %vm1107_vm10, %v1023_v46, %v195_v19  ;;  %v370_v44 = vadd.f32 %v369_v20, %v366_v35  ;;  %v373_v45 = vmul.f32 %v372_v36, %v1115_v31  ;;  %v411_v46 = vstv %s1083_s17  ;;  %s1153_s26 = sld [smem:[#allocation2 + $0x41]] }
  0x53   :  { %v1085_v17 = vpop.eup %715  ;;  %v659_v42 = vmul.f32 -1.442695, %v345_v34  ;;  %v414_v47 = vmul.f32 %v413_v37, %v1080_v54  ;;  %v204_v48 = vsel %vm201_vm11, %v203_v33, %v199_v38  ;;  %v458_v49 = vstv %s1099_s19  ;;  %s1158_s27 = sld [smem:[#allocation2 + $0x46]]  ;;  %s590_s19 = sshll.u32 %s1303_s2, 4  ;;  %s591_s19 = int_to_ptr.hbm [resolvable:$true] %s590_s19 }
  0x54   :  { %v718_v22 = vpop.eup %717  ;;  %v245_v21 = vmul.f32 %v1085_v17, %v1035_v55  ;;  %vm250_vm13 = vweird.f32 %v1085_v17  ;;  %vm1149_vm14 = vcmp.eq.f32.partialorder %v253_v39, 8.507059e+37  ;;  %v256_v51 = vor.u32 1.1754944e-38, %v255_v41  ;;  %s1167_s28 = sld [smem:[#allocation2 + $0x43]] }
  0x55   :  { %v1103_v28 = vadd.f32 1.0, %v718_v22  ;;  %v417_v53 = vstv %s1093_s18  ;;  %vm1163_vm15 = vmor %vm249_vm12, %vm250_vm13  ;;  %v374_v57 = vadd.f32 %v373_v45, %v370_v44  ;;  %v377_v58 = vmul.f32 %v376_v43, %v204_v48  ;;  %s1172_s29 = sld [smem:[#allocation2 + $0x44]] }
  0x56   :  { %v246_v30 = vsub.f32 1.0, %v245_v21  ;;  %v415_v59 = vadd.f32 %v414_v47, %v411_v46  ;;  %v459_v60 = vmul.f32 %v458_v49, %v1080_v54  ;;  %v456_v62 = vstv %s1105_s0  ;;  %s1179_s30 = sld [smem:[#allocation2 + $0x45]] }
  0x57   :  { %719 = vrcp.f32 %v1103_v28  ;;  %v462_v32 = vstv %s1111_s20  ;;  %v503_v63 = vstv %s1124_s1  ;;  %v418_v55 = vmul.f32 %v417_v53, %v1115_v31  ;;  %s1187_s3 = sld [smem:[#allocation2 + $0x47]] }
  0x58   :  { %v247_v40 = vmul.f32 %v1085_v17, %v246_v30  ;;  %721 = vpow2.f32 %v659_v42  ;;  %v501_v3 = vstv %s1119_s21  ;;  %v504_v4 = vmul.f32 %v503_v63, %v1080_v54  ;;  %s1195_s4 = sld [smem:[#allocation2 + $0x48]] }
  0x59   :  { %v507_v7 = vstv %s1131_s22  ;;  %vm302_vm0 = vweird.f32 %v1103_v28  ;;  %v308_v9 = vand.u32 2147483648, %v1103_v28  ;;  %v460_v10 = vadd.f32 %v459_v60, %v456_v62  ;;  %s1202_s5 = sld [smem:[#allocation2 + $0x49]] }
  0x5a   :  { %v248_v50 = vadd.f32 %v1085_v17, %v247_v40  ;;  %v463_v61 = vmul.f32 %v462_v32, %v1115_v31  ;;  %v421_v11 = vstv %s1141_s24  ;;  %v466_v54 = vstv %s1145_s25  ;;  %s1215_s6 = sld [smem:[#allocation2 + $0x4a]] }
  0x5b   :  { %v505_v12 = vadd.f32 %v504_v4, %v501_v3  ;;  %v508_v14 = vmul.f32 %v507_v7, %v1115_v31  ;;  %v511_v16 = vstv %s1153_s26  ;;  %v378_v21 = vadd.f32 %v377_v58, %v374_v57  ;;  %s1222_s7 = sld [smem:[#allocation2 + $0x4b]] }
  0x5c   :  { %v252_v6 = vsel %vm1163_vm15, %v1085_v17, %v248_v50  ;;  %v306_v17 = vand.u32 2147483647, %v1103_v28  ;;  %v380_v23 = vstv %s1136_s23  ;;  %v419_v24 = vadd.f32 %v418_v55, %v415_v59  ;;  %s1227_s8 = sld [smem:[#allocation2 + $0x4c]] }
  0x5d   :  { %v1147_v0 = vpop.eup %719  ;;  %v257_v18 = vsel %vm1149_vm14, %v256_v51, %v252_v6  ;;  %v309_v25 = vor.u32 1.1754944e-38, %v308_v9  ;;  %v422_v19 = vmul.f32 %v421_v11, %v204_v48  ;;  %v464_v26 = vadd.f32 %v463_v61, %v460_v10  ;;  %s1229_s9 = sld [smem:[#allocation2 + $0x4d]] }
  0x5e   :  { %v298_v52 = vmul.f32 %v1147_v0, %v1103_v28  ;;  %v722_v5 = vpop.eup %721  ;;  %vm303_vm1 = vweird.f32 %v1147_v0  ;;  %v467_v29 = vmul.f32 %v466_v54, %v204_v48  ;;  %v425_v30 = vstv %s1167_s28  ;;  %s1241_s10 = sld [smem:[#allocation2 + $0x52]] }
  0x5f   :  { %v1190_v13 = vadd.f32 1.0, %v722_v5  ;;  %vm1210_vm2 = vmor %vm302_vm0, %vm303_vm1  ;;  %v470_v27 = vstv %s1172_s29  ;;  %v509_v31 = vadd.f32 %v508_v14, %v505_v12  ;;  %v512_v28 = vmul.f32 %v511_v16, %v204_v48  ;;  %s1243_s11 = sld [smem:[#allocation2 + $0x56]] }
  0x60   :  { %v299_v2 = vsub.f32 1.0, %v298_v52  ;;  %vm307_vm3 = vcmp.eq.f32.partialorder %v306_v17, 8.507059e+37  ;;  %v381_v20 = vmul.f32 %v380_v23, %v257_v18  ;;  %v515_v34 = vstv %s1179_s30  ;;  %s1246_s12 = sld [smem:[#allocation2 + $0x53]] }
  0x61   :  { %723 = vrcp.f32 %v1190_v13  ;;  %v384_v35 = vstv %s1158_s27  ;;  %v429_v36 = vstv %s1187_s3  ;;  %v423_v38 = vadd.f32 %v422_v19, %v419_v24  ;;  %s1257_s13 = sld [smem:[#allocation2 + $0x54]] }
  0x62   :  { %v300_v8 = vmul.f32 %v1147_v0, %v299_v2  ;;  %v426_v39 = vmul.f32 %v425_v30, %v257_v18  ;;  %v468_v40 = vadd.f32 %v467_v29, %v464_v26  ;;  %v471_v41 = vmul.f32 %v470_v27, %v257_v18  ;;  %s1259_s14 = sld [smem:[#allocation2 + $0x55]] }
  0x63   :  { %v513_v44 = vadd.f32 %v512_v28, %v509_v31  ;;  %v516_v45 = vmul.f32 %v515_v34, %v257_v18  ;;  %v361_v46 = vand.u32 2147483648, %v1190_v13  ;;  %v382_v47 = vadd.f32 %v381_v20, %v378_v21 }
  0x64   :  { %v301_v15 = vadd.f32 %v1147_v0, %v300_v8  ;;  %v474_v48 = vstv %s1195_s4  ;;  %v519_v49 = vstv %s1202_s5  ;;  %vm355_vm4 = vweird.f32 %v1190_v13 }
  0x65   :  { %v359_v1 = vand.u32 2147483647, %v1190_v13  ;;  %v427_v51 = vadd.f32 %v426_v39, %v423_v38  ;;  %v472_v53 = vadd.f32 %v471_v41, %v468_v40  ;;  %v517_v58 = vadd.f32 %v516_v45, %v513_v44 }
  0x66   :  { %v305_v33 = vsel %vm1210_vm2, %v1147_v0, %v301_v15  ;;  %v362_v60 = vor.u32 1.1754944e-38, %v361_v46  ;;  %v388_v62 = vstv %s1215_s6  ;;  %v433_v63 = vstv %s1222_s7 }
  0x67   :  { %v724_v37 = vpop.eup %723  ;;  %v310_v42 = vsel %vm307_vm3, %v309_v25, %v305_v33  ;;  %vm360_vm7 = vcmp.eq.f32.partialorder %v359_v1, 8.507059e+37  ;;  %v478_v55 = vstv %s1227_s8  ;;  %v523_v3 = vstv %s1229_s9 }
  0x68   :  { %v351_v43 = vmul.f32 %v724_v37, %v1190_v13  ;;  %vm356_vm5 = vweird.f32 %v724_v37  ;;  %v385_v50 = vmul.f32 %v384_v35, %v310_v42  ;;  %v430_v52 = vmul.f32 %v429_v36, %v310_v42 }
  0x69   :  { %v475_v57 = vmul.f32 %v474_v48, %v310_v42  ;;  %v520_v59 = vmul.f32 %v519_v49, %v310_v42  ;;  %vm357_vm6 = vmor %vm355_vm4, %vm356_vm5  ;;  %v548_v35 = vstv %s1241_s10 }
  0x6a   :  { %v352_v0 = vsub.f32 1.0, %v351_v43  ;;  %v386_v32 = vadd.f32 %v385_v50, %v382_v47  ;;  %v431_v7 = vadd.f32 %v430_v52, %v427_v51 }
  0x6b   :  { %v476_v5 = vadd.f32 %v475_v57, %v472_v53  ;;  %v521_v6 = vadd.f32 %v520_v59, %v517_v58 }
  0x6c   :  { %v353_v56 = vmul.f32 %v724_v37, %v352_v0 }
  0x6e   :  { %v354_v2 = vadd.f32 %v724_v37, %v353_v56 }
  0x70   :  { %v358_v4 = vsel %vm357_vm6, %v724_v37, %v354_v2  ;;  %v546_v37 = vstv %s1243_s11 }
  0x71   :  { %v363_v8 = vsel %vm360_vm7, %v362_v60, %v358_v4 }
  0x72   :  { %v389_v9 = vmul.f32 %v388_v62, %v363_v8  ;;  %v434_v13 = vmul.f32 %v433_v63, %v363_v8  ;;  %v479_v10 = vmul.f32 %v478_v55, %v363_v8  ;;  %v524_v61 = vmul.f32 %v523_v3, %v363_v8 }
  0x74   :  { %v390_v11 = vadd.f32 %v389_v9, %v386_v32  ;;  %v435_v54 = vadd.f32 %v434_v13, %v431_v7  ;;  %v480_v12 = vadd.f32 %v479_v10, %v476_v5  ;;  %v525_v14 = vadd.f32 %v524_v61, %v521_v6 }
  0x75   :  { %v552_v32 = vstv %s1246_s12  ;;  %v556_v61 = vstv %s1257_s13 }
  0x76   :  { %v667_v15 = vmul.f32 -1.442695, %v390_v11  ;;  %v675_v17 = vmul.f32 -1.442695, %v435_v54  ;;  %v683_v16 = vmul.f32 -1.442695, %v480_v12  ;;  %v560_v12 = vstv %s1259_s14 }
  0x77   :  { %v691_v18 = vmul.f32 -1.442695, %v525_v14 }
  0x78   :  { %725 = vpow2.f32 %v667_v15 }
  0x79   :  { %727 = vpow2.f32 %v675_v17 }
  0x7a   :  { %729 = vpow2.f32 %v683_v16 }
  0x7b   :  { %731 = vpow2.f32 %v691_v18 }
  0x7e   :  { %v726_v22 = vpop.eup %725 }
  0x7f   :  { %v728_v21 = vpop.eup %727  ;;  %v394_v23 = vadd.f32 1.0, %v726_v22 }
  0x80   :  { %v730_v24 = vpop.eup %729  ;;  %v439_v25 = vadd.f32 1.0, %v728_v21 }
  0x81   :  { %v732_v19 = vpop.eup %731  ;;  %733 = vrcp.f32 %v394_v23  ;;  %v484_v26 = vadd.f32 1.0, %v730_v24  ;;  %v404_v30 = vand.u32 2147483647, %v394_v23  ;;  %v406_v27 = vand.u32 2147483648, %v394_v23 }
  0x82   :  { %735 = vrcp.f32 %v439_v25  ;;  %v529_v29 = vadd.f32 1.0, %v732_v19  ;;  %v449_v28 = vand.u32 2147483647, %v439_v25  ;;  %v451_v33 = vand.u32 2147483648, %v439_v25 }
  0x83   :  { %737 = vrcp.f32 %v484_v26  ;;  %vm400_vm8 = vweird.f32 %v394_v23  ;;  %vm445_vm9 = vweird.f32 %v439_v25  ;;  %vm1249_vm11 = vcmp.eq.f32.partialorder %v404_v30, 8.507059e+37 }
  0x84   :  { %739 = vrcp.f32 %v529_v29  ;;  %v407_v40 = vor.u32 1.1754944e-38, %v406_v27  ;;  %vm1253_vm13 = vcmp.eq.f32.partialorder %v449_v28, 8.507059e+37  ;;  %v452_v44 = vor.u32 1.1754944e-38, %v451_v33 }
  0x85   :  { %vm490_vm14 = vweird.f32 %v484_v26  ;;  %v494_v48 = vand.u32 2147483647, %v484_v26  ;;  %v496_v1 = vand.u32 2147483648, %v484_v26  ;;  %vm535_vm0 = vweird.f32 %v529_v29 }
  0x86   :  { %v541_v56 = vand.u32 2147483648, %v529_v29  ;;  %v539_v59 = vand.u32 2147483647, %v529_v29 }
  0x87   :  { %v734_v31 = vpop.eup %733  ;;  %vm1275_vm4 = vcmp.eq.f32.partialorder %v494_v48, 8.507059e+37  ;;  %v497_v4 = vor.u32 1.1754944e-38, %v496_v1 }
  0x88   :  { %v736_v20 = vpop.eup %735  ;;  %v396_v34 = vmul.f32 %v734_v31, %v394_v23  ;;  %vm401_vm10 = vweird.f32 %v734_v31  ;;  %v542_v8 = vor.u32 1.1754944e-38, %v541_v56  ;;  %vm540_vm7 = vcmp.eq.f32.partialorder %v539_v59, 8.507059e+37 }
  0x89   :  { %v441_v36 = vmul.f32 %v736_v20, %v439_v25  ;;  %v738_v41 = vpop.eup %737  ;;  %vm446_vm12 = vweird.f32 %v736_v20  ;;  %vm1263_vm15 = vmor %vm400_vm8, %vm401_vm10 }
  0x8a   :  { %v397_v38 = vsub.f32 1.0, %v396_v34  ;;  %v740_v45 = vpop.eup %739  ;;  %v486_v47 = vmul.f32 %v738_v41, %v484_v26  ;;  %vm1269_vm1 = vmor %vm445_vm9, %vm446_vm12  ;;  %vm491_vm2 = vweird.f32 %v738_v41 }
  0x8b   :  { %v442_v42 = vsub.f32 1.0, %v441_v36  ;;  %v531_v50 = vmul.f32 %v740_v45, %v529_v29  ;;  %vm536_vm3 = vweird.f32 %v740_v45  ;;  %vm1285_vm5 = vmor %vm490_vm14, %vm491_vm2 }
  0x8c   :  { %v398_v46 = vmul.f32 %v734_v31, %v397_v38  ;;  %v487_v53 = vsub.f32 1.0, %v486_v47  ;;  %vm537_vm6 = vmor %vm535_vm0, %vm536_vm3 }
  0x8d   :  { %v443_v0 = vmul.f32 %v736_v20, %v442_v42  ;;  %v532_v58 = vsub.f32 1.0, %v531_v50 }
  0x8e   :  { %v399_v51 = vadd.f32 %v734_v31, %v398_v46  ;;  %v488_v2 = vmul.f32 %v738_v41, %v487_v53 }
  0x8f   :  { %v444_v57 = vadd.f32 %v736_v20, %v443_v0  ;;  %v533_v7 = vmul.f32 %v740_v45, %v532_v58 }
  0x90   :  { %v403_v60 = vsel %vm1263_vm15, %v734_v31, %v399_v51  ;;  %v489_v6 = vadd.f32 %v738_v41, %v488_v2 }
  0x91   :  { %v408_v63 = vsel %vm1249_vm11, %v407_v40, %v403_v60  ;;  %v448_v55 = vsel %vm1269_vm1, %v736_v20, %v444_v57  ;;  %v534_v13 = vadd.f32 %v740_v45, %v533_v7 }
  0x92   :  { %v453_v5 = vsel %vm1253_vm13, %v452_v44, %v448_v55  ;;  %v549_v9 = vmul.f32 %v548_v35, %v408_v63  ;;  %v493_v11 = vsel %vm1285_vm5, %v738_v41, %v489_v6 }
  0x93   :  { %v553_v10 = vmul.f32 %v552_v32, %v453_v5  ;;  %v498_v14 = vsel %vm1275_vm4, %v497_v4, %v493_v11  ;;  %v538_v15 = vsel %vm537_vm6, %v740_v45, %v534_v13 }
  0x94   :  { %v550_v54 = vadd.f32 %v549_v9, %v546_v37  ;;  %v543_v17 = vsel %vm540_vm7, %v542_v8, %v538_v15  ;;  %v557_v18 = vmul.f32 %v556_v61, %v498_v14 }
  0x95   :  { %v561_v22 = vmul.f32 %v560_v12, %v543_v17 }
  0x96   :  { %v554_v16 = vadd.f32 %v553_v10, %v550_v54 }
  0x98   :  { %v558_v21 = vadd.f32 %v557_v18, %v554_v16 }
  0x9a   :  { %v562_v23 = vadd.f32 %v561_v22, %v558_v21 }
  0x9c   :  { %v697_v24 = vmul.f32 -1.442695, %v562_v23 }
  0x9e   :  { %741 = vpow2.f32 %v697_v24 }
  0xa4   :  { %v742_v25 = vpop.eup %741 }
  0xa5   :  { %v566_v19 = vadd.f32 1.0, %v742_v25 }
  0xa7   :  { %743 = vrcp.f32 %v566_v19  ;;  %v578_v30 = vand.u32 2147483648, %v566_v19  ;;  %vm572_vm8 = vweird.f32 %v566_v19  ;;  %v576_v31 = vand.u32 2147483647, %v566_v19 }
  0xa9   :  { %v579_v33 = vor.u32 1.1754944e-38, %v578_v30  ;;  %vm577_vm11 = vcmp.eq.f32.partialorder %v576_v31, 8.507059e+37 }
  0xad   :  { %v744_v26 = vpop.eup %743 }
  0xae   :  { %v568_v29 = vmul.f32 %v744_v26, %v566_v19  ;;  %vm573_vm9 = vweird.f32 %v744_v26 }
  0xaf   :  { %vm574_vm10 = vmor %vm572_vm8, %vm573_vm9 }
  0xb0   :  { %v569_v27 = vsub.f32 1.0, %v568_v29 }
  0xb2   :  { %v570_v28 = vmul.f32 %v744_v26, %v569_v27 }
  0xb4   :  { %v571_v20 = vadd.f32 %v744_v26, %v570_v28 }
  0xb6   :  { %v575_v34 = vsel %vm574_vm10, %v744_v26, %v571_v20 }
  0xb7   :  { %v580_v35 = vsel %vm577_vm11, %v579_v33, %v575_v34 }
  0xb8   :  { %582 = vst [vmem:[#allocation7] sm:$0x1] %v580_v35 }
  0xb9   :  { %593 = dma.vmem_to_hbm [thread:$0]  %s589_s16, 16, %s591_s19, [#allocation4]  }
  0xba   :  { %809 = dma.done.wait [#allocation4], 16  }
  0xbb   :  { %810 = vsyncadd [#allocation4], 4294967280 }
  0xbc   :  { %598 = vsyncpa [#allocation3], 1 }
  0xbd   :  { %599 = vsyncpa [#allocation4], 1 }
  0xbe   :  { %600 = vsyncpa [#allocation5], 1 }

</bundles_post_ra>
